<compile_context>
chip_gen: v7x
topology: tpu7x:2x2x1
jax: 0.10.0
libtpu: 0.0.40
codegen_flags: <defaults>
</compile_context>

<pallas_src>
import functools

import jax
import jax.numpy as jnp
from jax.experimental import pallas as pl
from jax.experimental.pallas import tpu as pltpu

LANE = 128  # hidden widths are lane-padded to multiples of this


def _cdiv(a, b):
    return -(-a // b)


def _round_up(x, m):
    return _cdiv(x, m) * m


def _choose_row_tiling(m, row_align, max_tile):
    """Pick (tile_m, padded_M): balanced tiles, >=2 tiles when M is big enough
    (so v7x's two TensorCores both get work on the "parallel" row axis),
    tile_m capped by the VMEM-derived limit, minimal padded-row waste."""
    max_tile = max(row_align, max_tile // row_align * row_align)
    if m <= 2 * row_align:
        tile = _round_up(max(m, 1), row_align)
        return tile, tile
    n_tiles = max(2, _cdiv(m, max_tile))
    tile = min(max_tile, _round_up(_cdiv(m, n_tiles), row_align))
    return tile, _round_up(m, tile)


def _mlp_fused_kernel(*refs, num_layers, compute_dtype):
    """All linear layers for one (tile_m, K0) row tile, fully in VMEM.

    refs = (x_ref, w_0..w_{L-1}, b_0..b_{L-1}, o_ref).  Hidden activations live
    in vregs/VMEM only; no HBM traffic between layers.
    """
    x_ref = refs[0]
    w_refs = refs[1:1 + num_layers]
    b_refs = refs[1 + num_layers:1 + 2 * num_layers]
    o_ref = refs[1 + 2 * num_layers]

    # f32 compute pins the exact fp32 MXU path (matches a Precision.HIGHEST
    # reference); bf16 compute takes the fast native bf16 path.
    dot_prec = (jax.lax.Precision.HIGHEST
                if jax.dtypes.canonicalize_dtype(compute_dtype) == jnp.float32
                else None)

    h = x_ref[...].astype(compute_dtype)
    for i in range(num_layers):
        y = jnp.dot(h, w_refs[i][...],
                    preferred_element_type=jnp.float32, precision=dot_prec)
        y = y + b_refs[i][...]                        # f32 bias on accumulator
        if i < num_layers - 1:
            h = jnp.maximum(y, 0.0).astype(compute_dtype)   # ReLU in f32
        else:
            n_valid = o_ref.shape[-1]                 # true output_dim
            o_ref[...] = y[:, :n_valid].astype(o_ref.dtype)


# Flipped to False once if pipeline_mode=pl.Buffered(1) is not supported by
# the installed jax/libtpu; the kernel then falls back to default buffering.
_PARAM_SINGLE_BUFFER_OK = True


def fused_mlp(x, weights, biases, *, out_dim, tile_m, compute_dtype,
              out_dtype, cost=None):
    """x: (Mp, K0) true (unpadded) feature dim; weights[i]: (Kin, Nout_pad);
    biases[i]: (1, Nout_pad) f32.  Returns (Mp, out_dim) in out_dtype.
    One pallas_call for the whole layer stack, tiled & pipelined over rows."""
    global _PARAM_SINGLE_BUFFER_OK

    Mp, k0 = x.shape
    num_layers = len(weights)
    assert Mp % tile_m == 0 and tile_m % 8 == 0
    grid = (Mp // tile_m,)

    out_dtype = jax.dtypes.canonicalize_dtype(out_dtype)
    c_isz = jax.dtypes.canonicalize_dtype(compute_dtype).itemsize
    param_bytes = (sum(w.size * w.dtype.itemsize for w in weights)
                   + sum(b.size * b.dtype.itemsize for b in biases))
    max_w = max([k0] + [w.shape[1] for w in weights])

    kernel = functools.partial(_mlp_fused_kernel, num_layers=num_layers,
                               compute_dtype=compute_dtype)

    def build(single_buffer_params):
        # Weights/biases have constant index_maps -> they are grid-resident;
        # single-buffering them halves their VMEM reservation.
        param_kw = (dict(pipeline_mode=pl.Buffered(buffer_count=1))
                    if single_buffer_params else {})
        in_specs = [pl.BlockSpec((tile_m, k0), lambda i: (i, 0))]
        in_specs += [pl.BlockSpec(w.shape, lambda i: (0, 0), **param_kw)
                     for w in weights]
        in_specs += [pl.BlockSpec(b.shape, lambda i: (0, 0), **param_kw)
                     for b in biases]
        out_spec = pl.BlockSpec((tile_m, out_dim), lambda i: (i, 0))

        # True per-step VMEM footprint: double-buffered row tiles, params x
        # their buffer count, f32 accumulator / ReLU / cast temporaries.
        work = 2 * tile_m * k0 * x.dtype.itemsize
        work += 2 * tile_m * out_dim * out_dtype.itemsize
        work += tile_m * max_w * (2 * 4 + c_isz)
        footprint = work + (1 if single_buffer_params else 2) * param_bytes
        # Leave headroom under v7x's 64 MiB total VMEM (v5e/v6e have 128 MiB).
        vmem_limit = int(min(max(footprint * 5 // 4 + (2 << 20), 8 << 20),
                             56 << 20))

        return pl.pallas_call(
            kernel,
            out_shape=jax.ShapeDtypeStruct((Mp, out_dim), out_dtype),
            grid=grid,
            in_specs=in_specs,
            out_specs=out_spec,
            compiler_params=pltpu.CompilerParams(
                dimension_semantics=("parallel",),   # row tiles -> v7x megacore
                vmem_limit_bytes=vmem_limit),
            cost_estimate=cost,
        )

    if _PARAM_SINGLE_BUFFER_OK:
        try:
            return build(True)(x, *weights, *biases)
        except Exception:
            _PARAM_SINGLE_BUFFER_OK = False   # fall back once, then remember
    return build(False)(x, *weights, *biases)


class MLP:
    """Pallas port of the PyTorch MLP: num_layers Linear layers with ReLU
    between all but the last one.  One fused Pallas kernel for the stack."""

    def __init__(self, input_dim, hidden_dim, output_dim, num_layers, key,
                 compute_dtype=jnp.bfloat16):
        # compute_dtype=bf16 (default): ~2-3x MXU rate, half the weight VMEM /
        # HBM traffic, f32 accumulation kept -> tolerance ~2e-2 vs reference.
        # compute_dtype=f32: exact path (Precision.HIGHEST), tolerance ~1e-4.
        self.num_layers = num_layers
        self.input_dim = input_dim
        self.output_dim = output_dim
        self.compute_dtype = compute_dtype

        c_isz = jax.dtypes.canonicalize_dtype(compute_dtype).itemsize
        # bf16 packs 16 rows per vreg -> 16-sublane row granularity.
        self.row_align = 8 * max(1, 4 // c_isz)

        h = [hidden_dim] * (num_layers - 1)
        dims_in = [input_dim] + h
        dims_out = h + [output_dim]

        self.params = []   # unpadded f32 (w, b): used by the pure-JAX reference
        self.w_pad = []    # (Kin, Nout_pad): K never padded beyond the previous
                           # layer's padded N; layer-0 K is the TRUE input_dim
        self.b_pad = []    # (1, Nout_pad) f32 biases (epilogue stays f32)
        k_prev = input_dim
        for i, (n, k) in enumerate(zip(dims_in, dims_out)):
            key, kw, kb = jax.random.split(key, 3)
            # deterministic PyTorch-Linear-like init (uniform +-1/sqrt(fan_in))
            bound = 1.0 / (n ** 0.5)
            w = jax.random.uniform(kw, (n, k), jnp.float32, -bound, bound)
            b = jax.random.uniform(kb, (1, k), jnp.float32, -bound, bound)
            self.params.append((w, b))

            n_pad, k_pad = k_prev, _round_up(k, LANE)
            w_p = jnp.zeros((n_pad, k_pad), jnp.float32).at[:n, :k].set(w)
            b_p = jnp.zeros((1, k_pad), jnp.float32).at[:, :k].set(b)
            self.w_pad.append(w_p.astype(compute_dtype))
            self.b_pad.append(b_p)
            k_prev = k_pad

        # Cap the row tile so the per-step footprint fits a v7x-safe VMEM
        # budget (64 MiB total there; v5e/v6e have 128 MiB so this is
        # conservative).  NOTE: if a single layer's weights alone exceeded
        # VMEM this design would need K/N-tiling of the weights; not needed
        # at DETR-head sizes.
        widths = [w.shape[1] for w in self.w_pad]
        max_w = max([input_dim] + widths)
        per_row = 2 * input_dim * 4 + 2 * output_dim * 4     # dbuf x/out tiles
        per_row += max_w * (2 * 4 + c_isz)                   # f32 acc + temps
        param_bytes = sum(w.size * w.dtype.itemsize for w in self.w_pad)
        param_bytes += sum(b.size * b.dtype.itemsize for b in self.b_pad)
        budget = (48 << 20) - 2 * param_bytes  # worst case: params double-buffered
        self.max_tile_rows = int(max(self.row_align,
                                     min(1024, budget // per_row)))

    def __call__(self, x):
        lead = x.shape[:-1]
        xm = x.reshape(-1, x.shape[-1])
        M = xm.shape[0]

        tile_m, Mp = _choose_row_tiling(M, self.row_align, self.max_tile_rows)
        if Mp != M:
            # Row padding only when M doesn't tile evenly (never lane padding
            # on K); junk rows are sliced away below.
            xm = jnp.zeros((Mp, xm.shape[1]), xm.dtype).at[:M].set(xm)

        # Advisory cost estimate from the TRUE (unpadded) dims.
        w_isz = jax.dtypes.canonicalize_dtype(self.compute_dtype).itemsize
        flops = sum(2 * M * w.shape[0] * w.shape[1] for w, _ in self.params)
        bytes_accessed = (
            M * self.input_dim * xm.dtype.itemsize
            + sum(w.size * w_isz + b.size * 4 for w, b in self.params)
            + M * self.output_dim * xm.dtype.itemsize)
        cost = pl.CostEstimate(flops=int(flops), transcendentals=0,
                               bytes_accessed=int(bytes_accessed))

        out = fused_mlp(xm, self.w_pad, self.b_pad,
                        out_dim=self.output_dim, tile_m=tile_m,
                        compute_dtype=self.compute_dtype, out_dtype=x.dtype,
                        cost=cost)
        if Mp != M:
            out = out[:M]
        return out.reshape(*lead, self.output_dim)


def _reference(mlp, x):
    """Pure-JAX reference matching F.relu(layer(x)) semantics (unpadded f32)."""
    lead = x.shape[:-1]
    xm = x.reshape(-1, x.shape[-1])
    for i, (w, b) in enumerate(mlp.params):
        xm = jnp.dot(xm, w, precision=jax.lax.Precision.HIGHEST) + b
        if i < mlp.num_layers - 1:
            xm = jnp.maximum(xm, 0.0)
    return xm.reshape(*lead, xm.shape[-1])


if __name__ == "__main__":
    key = jax.random.PRNGKey(0)
    k_in, k_params = jax.random.split(key)

    # Small shapes consistent with the module (e.g. the bbox_embed head of
    # Deformable DETR: hidden -> hidden -> 4, 3 layers).
    batch, seq = 2, 8
    input_dim, hidden_dim, output_dim, num_layers = 32, 32, 4, 3

    x = jax.random.normal(k_in, (batch, seq, input_dim), jnp.float32)

    # Default (bf16 compute, f32 accumulation): loosened tolerance.
    mlp_bf16 = MLP(input_dim, hidden_dim, output_dim, num_layers, k_params)
    out_bf16 = jax.block_until_ready(mlp_bf16(x))
    ref = jax.block_until_ready(_reference(mlp_bf16, x))
    assert out_bf16.shape == (batch, seq, output_dim), out_bf16.shape
    assert jnp.allclose(out_bf16, ref, atol=2e-2, rtol=2e-2), \
        "bf16 kernel mismatch vs reference"

    # f32 compute: strict check against the HIGHEST-precision reference
    # (same params: constructed from the same key).
    mlp_f32 = MLP(input_dim, hidden_dim, output_dim, num_layers, k_params,
                  compute_dtype=jnp.float32)
    out_f32 = jax.block_until_ready(mlp_f32(x))
    assert out_f32.shape == (batch, seq, output_dim), out_f32.shape
    assert jnp.allclose(out_f32, ref, atol=1e-4, rtol=1e-4), \
        "f32 kernel mismatch vs reference"

    print("KERNEL_OK")
</pallas_src>

<mosaic_0001>
module attributes {stable_mosaic.version = 11 : i64} {
  func.func @_mlp_fused_kernel(%arg0: i32, %arg1: memref<16x32xf32, #tpu.memory_space<vmem>>, %arg2: memref<32x128xbf16, #tpu.memory_space<vmem>>, %arg3: memref<128x128xbf16, #tpu.memory_space<vmem>>, %arg4: memref<128x128xbf16, #tpu.memory_space<vmem>>, %arg5: memref<1x128xf32, #tpu.memory_space<vmem>>, %arg6: memref<1x128xf32, #tpu.memory_space<vmem>>, %arg7: memref<1x128xf32, #tpu.memory_space<vmem>>, %arg8: memref<16x4xf32, #tpu.memory_space<vmem>>) attributes {dimension_semantics = [#tpu.dimension_semantics<parallel>], iteration_bounds = array<i64: 1>, scalar_prefetch = 0 : i64, scratch_operands = 0 : i64, tpu.core_type = #tpu.core_type<tc>, window_params = [{transform_indices = @transform_0, window_bounds = array<i64: 16, 32>}, {pipeline_mode = #tpu.pipeline_mode<synchronous>, transform_indices = @transform_1, window_bounds = array<i64: 32, 128>}, {pipeline_mode = #tpu.pipeline_mode<synchronous>, transform_indices = @transform_2, window_bounds = array<i64: 128, 128>}, {pipeline_mode = #tpu.pipeline_mode<synchronous>, transform_indices = @transform_3, window_bounds = array<i64: 128, 128>}, {pipeline_mode = #tpu.pipeline_mode<synchronous>, transform_indices = @transform_4, window_bounds = array<i64: 1, 128>}, {pipeline_mode = #tpu.pipeline_mode<synchronous>, transform_indices = @transform_5, window_bounds = array<i64: 1, 128>}, {pipeline_mode = #tpu.pipeline_mode<synchronous>, transform_indices = @transform_6, window_bounds = array<i64: 1, 128>}, {transform_indices = @transform_7, window_bounds = array<i64: 16, 4>}]} {
    %c0 = arith.constant 0 : index
    %c0_0 = arith.constant 0 : index
    %0 = vector.load %arg1[%c0, %c0_0] : memref<16x32xf32, #tpu.memory_space<vmem>>, vector<16x32xf32>
    %1 = arith.truncf %0 : vector<16x32xf32> to vector<16x32xbf16>
    %c0_1 = arith.constant 0 : index
    %c0_2 = arith.constant 0 : index
    %2 = vector.load %arg2[%c0_1, %c0_2] : memref<32x128xbf16, #tpu.memory_space<vmem>>, vector<32x128xbf16>
    %cst = arith.constant dense<0.000000e+00> : vector<16x128xf32>
    %3 = tpu.matmul %1, %2, %cst {dimension_numbers = #tpu.dot_dimension_numbers<[1], [0], [0], [1], [0, 0, 1, 1], [], []>} : vector<16x32xbf16>, vector<32x128xbf16>, vector<16x128xf32> -> vector<16x128xf32>
    %c0_3 = arith.constant 0 : index
    %c0_4 = arith.constant 0 : index
    %4 = vector.load %arg5[%c0_3, %c0_4] : memref<1x128xf32, #tpu.memory_space<vmem>>, vector<1x128xf32>
    %5 = vector.broadcast %4 : vector<1x128xf32> to vector<16x128xf32>
    %6 = arith.addf %3, %5 : vector<16x128xf32>
    %cst_5 = arith.constant 0.000000e+00 : f32
    %7 = vector.broadcast %cst_5 : f32 to vector<16x128xf32>
    %8 = arith.maximumf %6, %7 : vector<16x128xf32>
    %9 = arith.truncf %8 : vector<16x128xf32> to vector<16x128xbf16>
    %c0_6 = arith.constant 0 : index
    %c0_7 = arith.constant 0 : index
    %10 = vector.load %arg3[%c0_6, %c0_7] : memref<128x128xbf16, #tpu.memory_space<vmem>>, vector<128x128xbf16>
    %cst_8 = arith.constant dense<0.000000e+00> : vector<16x128xf32>
    %11 = tpu.matmul %9, %10, %cst_8 {dimension_numbers = #tpu.dot_dimension_numbers<[1], [0], [0], [1], [0, 0, 1, 1], [], []>} : vector<16x128xbf16>, vector<128x128xbf16>, vector<16x128xf32> -> vector<16x128xf32>
    %c0_9 = arith.constant 0 : index
    %c0_10 = arith.constant 0 : index
    %12 = vector.load %arg6[%c0_9, %c0_10] : memref<1x128xf32, #tpu.memory_space<vmem>>, vector<1x128xf32>
    %13 = vector.broadcast %12 : vector<1x128xf32> to vector<16x128xf32>
    %14 = arith.addf %11, %13 : vector<16x128xf32>
    %cst_11 = arith.constant 0.000000e+00 : f32
    %15 = vector.broadcast %cst_11 : f32 to vector<16x128xf32>
    %16 = arith.maximumf %14, %15 : vector<16x128xf32>
    %17 = arith.truncf %16 : vector<16x128xf32> to vector<16x128xbf16>
    %c0_12 = arith.constant 0 : index
    %c0_13 = arith.constant 0 : index
    %18 = vector.load %arg4[%c0_12, %c0_13] : memref<128x128xbf16, #tpu.memory_space<vmem>>, vector<128x128xbf16>
    %cst_14 = arith.constant dense<0.000000e+00> : vector<16x128xf32>
    %19 = tpu.matmul %17, %18, %cst_14 {dimension_numbers = #tpu.dot_dimension_numbers<[1], [0], [0], [1], [0, 0, 1, 1], [], []>} : vector<16x128xbf16>, vector<128x128xbf16>, vector<16x128xf32> -> vector<16x128xf32>
    %c0_15 = arith.constant 0 : index
    %c0_16 = arith.constant 0 : index
    %20 = vector.load %arg7[%c0_15, %c0_16] : memref<1x128xf32, #tpu.memory_space<vmem>>, vector<1x128xf32>
    %21 = vector.broadcast %20 : vector<1x128xf32> to vector<16x128xf32>
    %22 = arith.addf %19, %21 : vector<16x128xf32>
    %23 = vector.extract_strided_slice %22 {offsets = [0, 0], sizes = [16, 4], strides = [1, 1]} : vector<16x128xf32> to vector<16x4xf32>
    %c0_17 = arith.constant 0 : index
    %c0_18 = arith.constant 0 : index
    %24 = vector.load %arg8[%c0_17, %c0_18] : memref<16x4xf32, #tpu.memory_space<vmem>>, vector<16x4xf32>
    tpu.vector_store %arg8[%c0_17, %c0_18], %23 {strides = array<i32>} : memref<16x4xf32, #tpu.memory_space<vmem>>, vector<16x4xf32>,
    return
  }
  func.func @transform_0(%arg0: i32) -> (i32, i32) {
    %c0_i32 = arith.constant 0 : i32
    %c0_i32_0 = arith.constant 0 : i32
    return %arg0, %c0_i32 : i32, i32
  }
  func.func @transform_1(%arg0: i32) -> (i32, i32) {
    %c0_i32 = arith.constant 0 : i32
    %c0_i32_0 = arith.constant 0 : i32
    %c0_i32_1 = arith.constant 0 : i32
    return %c0_i32, %c0_i32_0 : i32, i32
  }
  func.func @transform_2(%arg0: i32) -> (i32, i32) {
    %c0_i32 = arith.constant 0 : i32
    %c0_i32_0 = arith.constant 0 : i32
    %c0_i32_1 = arith.constant 0 : i32
    return %c0_i32, %c0_i32_0 : i32, i32
  }
  func.func @transform_3(%arg0: i32) -> (i32, i32) {
    %c0_i32 = arith.constant 0 : i32
    %c0_i32_0 = arith.constant 0 : i32
    %c0_i32_1 = arith.constant 0 : i32
    return %c0_i32, %c0_i32_0 : i32, i32
  }
  func.func @transform_4(%arg0: i32) -> (i32, i32) {
    %c0_i32 = arith.constant 0 : i32
    %c0_i32_0 = arith.constant 0 : i32
    %c0_i32_1 = arith.constant 0 : i32
    return %c0_i32, %c0_i32_0 : i32, i32
  }
  func.func @transform_5(%arg0: i32) -> (i32, i32) {
    %c0_i32 = arith.constant 0 : i32
    %c0_i32_0 = arith.constant 0 : i32
    %c0_i32_1 = arith.constant 0 : i32
    return %c0_i32, %c0_i32_0 : i32, i32
  }
  func.func @transform_6(%arg0: i32) -> (i32, i32) {
    %c0_i32 = arith.constant 0 : i32
    %c0_i32_0 = arith.constant 0 : i32
    %c0_i32_1 = arith.constant 0 : i32
    return %c0_i32, %c0_i32_0 : i32, i32
  }
  func.func @transform_7(%arg0: i32) -> (i32, i32) {
    %c0_i32 = arith.constant 0 : i32
    %c0_i32_0 = arith.constant 0 : i32
    return %arg0, %c0_i32 : i32, i32
  }
}

module attributes {stable_mosaic.version = 11 : i64} {
  func.func @_mlp_fused_kernel(%arg0: i32, %arg1: memref<16x32xf32, #tpu.memory_space<vmem>>, %arg2: memref<32x128xbf16, #tpu.memory_space<vmem>>, %arg3: memref<128x128xbf16, #tpu.memory_space<vmem>>, %arg4: memref<128x128xbf16, #tpu.memory_space<vmem>>, %arg5: memref<1x128xf32, #tpu.memory_space<vmem>>, %arg6: memref<1x128xf32, #tpu.memory_space<vmem>>, %arg7: memref<1x128xf32, #tpu.memory_space<vmem>>, %arg8: memref<16x4xf32, #tpu.memory_space<vmem>>) attributes {dimension_semantics = [#tpu.dimension_semantics<parallel>], iteration_bounds = array<i64: 1>, scalar_prefetch = 0 : i64, scratch_operands = 0 : i64, tpu.core_type = #tpu.core_type<tc>, window_params = [{transform_indices = @transform_0, window_bounds = array<i64: 16, 32>}, {pipeline_mode = #tpu.pipeline_mode<synchronous>, transform_indices = @transform_1, window_bounds = array<i64: 32, 128>}, {pipeline_mode = #tpu.pipeline_mode<synchronous>, transform_indices = @transform_2, window_bounds = array<i64: 128, 128>}, {pipeline_mode = #tpu.pipeline_mode<synchronous>, transform_indices = @transform_3, window_bounds = array<i64: 128, 128>}, {pipeline_mode = #tpu.pipeline_mode<synchronous>, transform_indices = @transform_4, window_bounds = array<i64: 1, 128>}, {pipeline_mode = #tpu.pipeline_mode<synchronous>, transform_indices = @transform_5, window_bounds = array<i64: 1, 128>}, {pipeline_mode = #tpu.pipeline_mode<synchronous>, transform_indices = @transform_6, window_bounds = array<i64: 1, 128>}, {transform_indices = @transform_7, window_bounds = array<i64: 16, 4>}]} {
    %c0 = arith.constant 0 : index
    %c0_0 = arith.constant 0 : index
    %0 = vector.load %arg1[%c0, %c0_0] : memref<16x32xf32, #tpu.memory_space<vmem>>, vector<16x32xf32>
    %1 = arith.truncf %0 : vector<16x32xf32> to vector<16x32xbf16>
    %c0_1 = arith.constant 0 : index
    %c0_2 = arith.constant 0 : index
    %2 = vector.load %arg2[%c0_1, %c0_2] : memref<32x128xbf16, #tpu.memory_space<vmem>>, vector<32x128xbf16>
    %cst = arith.constant dense<0.000000e+00> : vector<16x128xf32>
    %3 = tpu.matmul %1, %2, %cst {dimension_numbers = #tpu.dot_dimension_numbers<[1], [0], [0], [1], [0, 0, 1, 1], [], []>} : vector<16x32xbf16>, vector<32x128xbf16>, vector<16x128xf32> -> vector<16x128xf32>
    %c0_3 = arith.constant 0 : index
    %c0_4 = arith.constant 0 : index
    %4 = vector.load %arg5[%c0_3, %c0_4] : memref<1x128xf32, #tpu.memory_space<vmem>>, vector<1x128xf32>
    %5 = vector.broadcast %4 : vector<1x128xf32> to vector<16x128xf32>
    %6 = arith.addf %3, %5 : vector<16x128xf32>
    %cst_5 = arith.constant 0.000000e+00 : f32
    %7 = vector.broadcast %cst_5 : f32 to vector<16x128xf32>
    %8 = arith.maximumf %6, %7 : vector<16x128xf32>
    %9 = arith.truncf %8 : vector<16x128xf32> to vector<16x128xbf16>
    %c0_6 = arith.constant 0 : index
    %c0_7 = arith.constant 0 : index
    %10 = vector.load %arg3[%c0_6, %c0_7] : memref<128x128xbf16, #tpu.memory_space<vmem>>, vector<128x128xbf16>
    %cst_8 = arith.constant dense<0.000000e+00> : vector<16x128xf32>
    %11 = tpu.matmul %9, %10, %cst_8 {dimension_numbers = #tpu.dot_dimension_numbers<[1], [0], [0], [1], [0, 0, 1, 1], [], []>} : vector<16x128xbf16>, vector<128x128xbf16>, vector<16x128xf32> -> vector<16x128xf32>
    %c0_9 = arith.constant 0 : index
    %c0_10 = arith.constant 0 : index
    %12 = vector.load %arg6[%c0_9, %c0_10] : memref<1x128xf32, #tpu.memory_space<vmem>>, vector<1x128xf32>
    %13 = vector.broadcast %12 : vector<1x128xf32> to vector<16x128xf32>
    %14 = arith.addf %11, %13 : vector<16x128xf32>
    %cst_11 = arith.constant 0.000000e+00 : f32
    %15 = vector.broadcast %cst_11 : f32 to vector<16x128xf32>
    %16 = arith.maximumf %14, %15 : vector<16x128xf32>
    %17 = arith.truncf %16 : vector<16x128xf32> to vector<16x128xbf16>
    %c0_12 = arith.constant 0 : index
    %c0_13 = arith.constant 0 : index
    %18 = vector.load %arg4[%c0_12, %c0_13] : memref<128x128xbf16, #tpu.memory_space<vmem>>, vector<128x128xbf16>
    %cst_14 = arith.constant dense<0.000000e+00> : vector<16x128xf32>
    %19 = tpu.matmul %17, %18, %cst_14 {dimension_numbers = #tpu.dot_dimension_numbers<[1], [0], [0], [1], [0, 0, 1, 1], [], []>} : vector<16x128xbf16>, vector<128x128xbf16>, vector<16x128xf32> -> vector<16x128xf32>
    %c0_15 = arith.constant 0 : index
    %c0_16 = arith.constant 0 : index
    %20 = vector.load %arg7[%c0_15, %c0_16] : memref<1x128xf32, #tpu.memory_space<vmem>>, vector<1x128xf32>
    %21 = vector.broadcast %20 : vector<1x128xf32> to vector<16x128xf32>
    %22 = arith.addf %19, %21 : vector<16x128xf32>
    %23 = vector.extract_strided_slice %22 {offsets = [0, 0], sizes = [16, 4], strides = [1, 1]} : vector<16x128xf32> to vector<16x4xf32>
    %c0_17 = arith.constant 0 : index
    %c0_18 = arith.constant 0 : index
    %24 = vector.load %arg8[%c0_17, %c0_18] : memref<16x4xf32, #tpu.memory_space<vmem>>, vector<16x4xf32>
    tpu.vector_store %arg8[%c0_17, %c0_18], %23 {strides = array<i32>} : memref<16x4xf32, #tpu.memory_space<vmem>>, vector<16x4xf32>,
    return
  }
  func.func @transform_0(%arg0: i32) -> (i32, i32) {
    %c0_i32 = arith.constant 0 : i32
    %c0_i32_0 = arith.constant 0 : i32
    return %arg0, %c0_i32 : i32, i32
  }
  func.func @transform_1(%arg0: i32) -> (i32, i32) {
    %c0_i32 = arith.constant 0 : i32
    %c0_i32_0 = arith.constant 0 : i32
    %c0_i32_1 = arith.constant 0 : i32
    return %c0_i32, %c0_i32_0 : i32, i32
  }
  func.func @transform_2(%arg0: i32) -> (i32, i32) {
    %c0_i32 = arith.constant 0 : i32
    %c0_i32_0 = arith.constant 0 : i32
    %c0_i32_1 = arith.constant 0 : i32
    return %c0_i32, %c0_i32_0 : i32, i32
  }
  func.func @transform_3(%arg0: i32) -> (i32, i32) {
    %c0_i32 = arith.constant 0 : i32
    %c0_i32_0 = arith.constant 0 : i32
    %c0_i32_1 = arith.constant 0 : i32
    return %c0_i32, %c0_i32_0 : i32, i32
  }
  func.func @transform_4(%arg0: i32) -> (i32, i32) {
    %c0_i32 = arith.constant 0 : i32
    %c0_i32_0 = arith.constant 0 : i32
    %c0_i32_1 = arith.constant 0 : i32
    return %c0_i32, %c0_i32_0 : i32, i32
  }
  func.func @transform_5(%arg0: i32) -> (i32, i32) {
    %c0_i32 = arith.constant 0 : i32
    %c0_i32_0 = arith.constant 0 : i32
    %c0_i32_1 = arith.constant 0 : i32
    return %c0_i32, %c0_i32_0 : i32, i32
  }
  func.func @transform_6(%arg0: i32) -> (i32, i32) {
    %c0_i32 = arith.constant 0 : i32
    %c0_i32_0 = arith.constant 0 : i32
    %c0_i32_1 = arith.constant 0 : i32
    return %c0_i32, %c0_i32_0 : i32, i32
  }
  func.func @transform_7(%arg0: i32) -> (i32, i32) {
    %c0_i32 = arith.constant 0 : i32
    %c0_i32_0 = arith.constant 0 : i32
    return %arg0, %c0_i32 : i32, i32
  }
}

</mosaic_0001>

<bundles_post_ra>
// kernel: tpu_custom_call.1
= control target key start
LH: loop header
LB: loop body
LE: loop exit
PB: predicated region body
PF: predicated region fallthrough
CT: control target
= control target key end

     0   :  { %12 = vsyncpa [#allocation3], 0  ;;  %s759_s0 = inlined_call_operand.hbm [shape: f32[16,32], index: 0, kind: input, shape index: {}]   ;;  %s760_s1 = inlined_call_operand.hbm [shape: bf16[32,128], index: 1, kind: input, shape index: {}]   ;;  %s761_s2 = inlined_call_operand.hbm [shape: bf16[128,128], index: 2, kind: input, shape index: {}]   ;;  %s762_s3 = inlined_call_operand.hbm [shape: bf16[128,128], index: 3, kind: input, shape index: {}]   ;;  %s763_s4 = inlined_call_operand.vmem [shape: f32[1,128], index: 4, kind: input, shape index: {}]   ;;  %s764_s5 = inlined_call_operand.vmem [shape: f32[1,128], index: 5, kind: input, shape index: {}]   ;;  %s765_s6 = inlined_call_operand.vmem [shape: f32[1,128], index: 6, kind: input, shape index: {}]   ;;  %s766_s7 = inlined_call_operand.vmem [shape: f32[16,4], index: 7, kind: output, shape index: {}]  }
   0x1   :  { %13 = vsyncpa [#allocation5], 0 }
   0x2   :  { %14 = vsyncpa [#allocation8], 0  ;;  %s606_s24 = smov [#allocation4]   ;;  %s512_s28 = scalar_lea.hbm %s760_s1, 256 }
   0x3   :  { %s32_s25 = sshll.u32 %s606_s24, 4  ;;  %p513_p0 = scmp.ne.s32.totalorder %s760_s1, %s512_s28  ;;  %s33_s25 = int_to_ptr.vmem [resolvable:$true] %s32_s25 }
   0x4   :  { %p516_p1 = scmp.lt.u32.totalorder %s512_s28, %s760_s1 }
   0x6   :  { %p518_p2 = pnand %p516_p1, %p513_p0 }
   0x8   :  { %521 = shalt.err (!%p518_p2)
}
   0x9   :  { %s522_s10 = scalar_lea.vmem %s33_s25, 256  ;;  %p527_p4 = scmp.lt.s32.totalorder %s33_s25, %s33_s25 }
   0xa   :  { %p523_p3 = scmp.ne.s32.totalorder %s33_s25, %s522_s10  ;;  %p528_p5 = scmp.lt.s32.totalorder %s522_s10, %s522_s10 }
   0xc   :  { %p529_p6 = por %p528_p5, %p527_p4 }
   0xe   :  { %p530_p7 = pnand %p529_p6, %p523_p3 }
  0x10   :  { %533 = shalt.err (!%p530_p7)
}
  0x11   :  { %s607_s11 = smov 64   ;;  %s608_s12 = smov 4  }
  0x12   :  { %38 = dma.hbm_to_vmem [thread:$0]  %s760_s1, 256, %s33_s25, [#allocation5], %s607_s11, %s607_s11, %s608_s12  }
  0x13   :  { %s609_s15 = smov [#allocation2]   ;;  %s534_s19 = scalar_lea.hbm %s759_s0, 256 }
  0x14   :  { %s20_s16 = sshll.u32 %s609_s15, 4  ;;  %p535_p8 = scmp.ne.s32.totalorder %s759_s0, %s534_s19  ;;  %s21_s16 = int_to_ptr.vmem [resolvable:$true] %s20_s16 }
  0x15   :  { %p538_p9 = scmp.lt.u32.totalorder %s534_s19, %s759_s0 }
  0x17   :  { %p540_p10 = pnand %p538_p9, %p535_p8 }
  0x19   :  { %543 = shalt.err (!%p540_p10)
}
  0x1a   :  { %s544_s24 = scalar_lea.vmem %s21_s16, 256  ;;  %p549_p12 = scmp.lt.s32.totalorder %s21_s16, %s21_s16 }
  0x1b   :  { %p545_p11 = scmp.ne.s32.totalorder %s21_s16, %s544_s24  ;;  %p550_p13 = scmp.lt.s32.totalorder %s544_s24, %s544_s24 }
  0x1d   :  { %p551_p0 = por %p550_p13, %p549_p12 }
  0x1f   :  { %p552_p1 = pnand %p551_p0, %p545_p11 }
  0x21   :  { %555 = shalt.err (!%p552_p1)
}
  0x22   :  { %s610_s1 = smov 128   ;;  %s611_s25 = smov 8  }
  0x23   :  { %26 = dma.hbm_to_vmem [thread:$0]  %s759_s0, 256, %s21_s16, [#allocation3], %s610_s1, %s610_s1, %s611_s25  }
  0x24   :  { %s612_s28 = smov [#allocation6]   ;;  %s613_s30 = smov [#allocation7]  }
  0x25   :  { %s44_s29 = sshll.u32 %s612_s28, 4  ;;  %s56_s8 = sshll.u32 %s613_s30, 4  ;;  %s45_s29 = int_to_ptr.vmem [resolvable:$true] %s44_s29  ;;  %s683_s8 = int_to_ptr.vmem [resolvable:$true] %s56_s8 }
  0x26   :  { %s556_s13 = scalar_lea.hbm %s761_s2, 1024 }
  0x27   :  { %p557_p2 = scmp.ne.s32.totalorder %s761_s2, %s556_s13  ;;  %p560_p3 = scmp.lt.u32.totalorder %s556_s13, %s761_s2 }
  0x29   :  { %p562_p4 = pnand %p560_p3, %p557_p2 }
  0x2b   :  { %565 = shalt.err (!%p562_p4)
}
  0x2c   :  { %s566_s0 = scalar_lea.vmem %s45_s29, 1024  ;;  %p571_p6 = scmp.lt.s32.totalorder %s45_s29, %s45_s29 }
  0x2d   :  { %p567_p5 = scmp.ne.s32.totalorder %s45_s29, %s566_s0  ;;  %p572_p7 = scmp.lt.s32.totalorder %s566_s0, %s566_s0 }
  0x2f   :  { %p573_p8 = por %p572_p7, %p571_p6 }
  0x31   :  { %p574_p9 = pnand %p573_p8, %p567_p5 }
  0x33   :  { %577 = shalt.err (!%p574_p9)
}
  0x34   :  { %50 = dma.hbm_to_vmem [thread:$0]  %s761_s2, 1024, %s45_s29, [#allocation5], %s607_s11, %s607_s11, %s608_s12  }
  0x35   :  { %s578_s22 = scalar_lea.hbm %s762_s3, 1024 }
  0x36   :  { %p579_p10 = scmp.ne.s32.totalorder %s762_s3, %s578_s22  ;;  %p582_p11 = scmp.lt.u32.totalorder %s578_s22, %s762_s3 }
  0x38   :  { %p584_p12 = pnand %p582_p11, %p579_p10 }
  0x3a   :  { %587 = shalt.err (!%p584_p12)
}
  0x3b   :  { %s588_s26 = scalar_lea.vmem %s683_s8, 1024  ;;  %p593_p0 = scmp.lt.s32.totalorder %s683_s8, %s683_s8 }
  0x3c   :  { %p589_p13 = scmp.ne.s32.totalorder %s683_s8, %s588_s26  ;;  %p594_p1 = scmp.lt.s32.totalorder %s588_s26, %s588_s26 }
  0x3e   :  { %p595_p2 = por %p594_p1, %p593_p0 }
  0x40   :  { %p596_p3 = pnand %p595_p2, %p589_p13 }
  0x42   :  { %599 = shalt.err (!%p596_p3)
}
  0x43   :  { %62 = dma.hbm_to_vmem [thread:$0]  %s762_s3, 1024, %s683_s8, [#allocation8], %s607_s11, %s607_s11, %s608_s12  }
  0x44   :  { %600 = dma.done.wait [#allocation3], 256  }
  0x45   :  { %601 = vsyncadd [#allocation3], 4294967040 }
  0x46   :  { %602 = dma.done.wait [#allocation5], 1280  }
  0x47   :  { %603 = vsyncadd [#allocation5], 4294966016 }
  0x48   :  { %604 = dma.done.wait [#allocation8], 1024  }
  0x49   :  { %605 = vsyncadd [#allocation8], 4294966272  ;;  %v614_v0 = vmov 0.0   ;;  %vm615_vm0 = vmmov 0   ;;  %v494_v1 = vld [vmem:[#allocation4] sm:$0xff]   ;;  %v495_v2 = vld [vmem:[#allocation4 + $0x8] sm:$0xff]  }
  0x4a   :  { %436 = vmatprep.subr.bf16.mxu0 %v614_v0  ;;  %440 = vmatprep.mubr.msk.bf16.mxu0 %vm615_vm0, %v614_v0  ;;  %v82_v3 = vld [vmem:[#allocation2] sm:$0xff]  ;;  %v83_v4 = vld [vmem:[#allocation2 + $0x8] sm:$0xff]  ;;  %vm108_vm1 = vcmask 261120   ;;  %v498_v8 = vld [vmem:[#allocation6 + $0x10] sm:$0xff]   ;;  %vm383_vm2 = vcmask 31744  }
  0x4b   :  { %444 = vmatprep.subr.bf16.mxu1 %v614_v0  ;;  %460 = vmatprep.mubr.msk.bf16.mxu1 %vm615_vm0, %v614_v0  ;;  %v496_v5 = vld [vmem:[#allocation6] sm:$0xff]   ;;  %v84_v6 = vpack.c.bf16 %v83_v4, %v82_v3  ;;  %v497_v7 = vld [vmem:[#allocation6 + $0x8] sm:$0xff]   ;;  %v499_v9 = vld [vmem:[#allocation6 + $0x18] sm:$0xff]  }
  0x4c   :  { %437 = vmatpush3.bf16.msra.mxu0 %v494_v1  ;;  %445 = vmatpush3.bf16.msra.mxu1 %v496_v5  ;;  %v500_v10 = vld [vmem:[#allocation6 + $0x20] sm:$0xff]   ;;  %v501_v11 = vld [vmem:[#allocation6 + $0x28] sm:$0xff]   ;;  %v502_v12 = vld [vmem:[#allocation6 + $0x30] sm:$0xff]  }
  0x4d   :  { %438 = vmatprep.subr.bf16.mxu0 %v614_v0  ;;  %446 = vmatprep.subr.bf16.mxu1 %v614_v0  ;;  %v503_v13 = vld [vmem:[#allocation6 + $0x38] sm:$0xff]   ;;  %v504_v14 = vld [vmem:[#allocation7] sm:$0xff]   ;;  %v505_v15 = vld [vmem:[#allocation7 + $0x8] sm:$0xff]  }
  0x4e   :  { %v506_v16 = vld [vmem:[#allocation7 + $0x10] sm:$0xff]   ;;  %v507_v17 = vld [vmem:[#allocation7 + $0x18] sm:$0xff]   ;;  %v508_v18 = vld [vmem:[#allocation7 + $0x20] sm:$0xff]  }
  0x4f   :  { %v509_v19 = vld [vmem:[#allocation7 + $0x28] sm:$0xff]   ;;  %v393_v20 = vld [vmem:[%s763_s4] ss:$0 sm:$0xff]  ;;  %v510_v30 = vld [vmem:[#allocation7 + $0x30] sm:$0xff]  }
  0x50   :  { %439 = vmatpush3.bf16.msra.mxu0 %v495_v2  ;;  %447 = vmatpush3.bf16.msra.mxu1 %v497_v7  ;;  %v511_v31 = vld [vmem:[#allocation7 + $0x38] sm:$0xff]   ;;  %v397_v32 = vld [vmem:[%s764_s5] ss:$0 sm:$0xff] }
  0x51   :  { %464 = vmatprep.subr.bf16.mxu0 %v614_v0  ;;  %448 = vmatprep.subr.bf16.mxu1 %v614_v0  ;;  %v406_v42 = vld [vmem:[%s765_s6] ss:$0 sm:$0xff] }
  0x53   :  { %441 = vmatmul.mubr.msk.bf16.vlgmr.msra.gmra.mrb[0].mxu0 %vm108_vm1, %v84_v6 }
  0x54   :  { %480 = vmatprep.mubr.msk.bf16.mxu0 %vm615_vm0, %v614_v0  ;;  %449 = vmatpush3.bf16.msra.mxu1 %v498_v8 }
  0x55   :  { %450 = vmatprep.subr.bf16.mxu1 %v614_v0  ;;  %465 = vmatpush3.bf16.msra.mxu0 %v504_v14 }
  0x56   :  { %466 = vmatprep.subr.bf16.mxu0 %v614_v0 }
  0x58   :  { %451 = vmatpush3.bf16.msra.mxu1 %v499_v9 }
  0x59   :  { %452 = vmatprep.subr.bf16.mxu1 %v614_v0  ;;  %467 = vmatpush3.bf16.msra.mxu0 %v505_v15 }
  0x5a   :  { %468 = vmatprep.subr.bf16.mxu0 %v614_v0 }
  0x5c   :  { %453 = vmatpush3.bf16.msra.mxu1 %v500_v10 }
  0x5d   :  { %454 = vmatprep.subr.bf16.mxu1 %v614_v0  ;;  %469 = vmatpush3.bf16.msra.mxu0 %v506_v16 }
  0x5e   :  { %470 = vmatprep.subr.bf16.mxu0 %v614_v0 }
  0x60   :  { %455 = vmatpush3.bf16.msra.mxu1 %v501_v11 }
  0x61   :  { %456 = vmatprep.subr.bf16.mxu1 %v614_v0  ;;  %471 = vmatpush3.bf16.msra.mxu0 %v507_v17 }
  0x62   :  { %472 = vmatprep.subr.bf16.mxu0 %v614_v0 }
  0x64   :  { %457 = vmatpush3.bf16.msra.mxu1 %v502_v12 }
  0x65   :  { %458 = vmatprep.subr.bf16.mxu1 %v614_v0  ;;  %473 = vmatpush3.bf16.msra.mxu0 %v508_v18 }
  0x66   :  { %474 = vmatprep.subr.bf16.mxu0 %v614_v0 }
  0x68   :  { %459 = vmatpush3.bf16.msra.mxu1 %v503_v13 }
  0x69   :  { %475 = vmatpush3.bf16.msra.mxu0 %v509_v19 }
  0x6a   :  { %476 = vmatprep.subr.bf16.mxu0 %v614_v0 }
  0x6d   :  { %477 = vmatpush3.bf16.msra.mxu0 %v510_v30 }
  0x6e   :  { %478 = vmatprep.subr.bf16.mxu0 %v614_v0 }
  0x71   :  { %479 = vmatpush3.bf16.msra.mxu0 %v511_v31 }
 0x126   :  { %v146_v21 = vpop.f32.mrb[0].mxu0 }
 0x127   :  { %v147_v22 = vadd.f32 %v393_v20, %v146_v21  ;;  %v442_v23 = vpop.f32.mrb[1].mxu0 }
 0x128   :  { %v149_v24 = vpop.f32.mrb[2].mxu0 }
 0x129   :  { %v150_v25 = vadd.f32 %v393_v20, %v149_v24  ;;  %v443_v26 = vpop.f32.mrb[3].mxu0  ;;  %v153_v27 = vmax.f32 %v147_v22, 0.0 }
 0x12b   :  { %v154_v28 = vmax.f32 %v150_v25, 0.0 }
 0x12d   :  { %v155_v29 = vpack.c.bf16 %v154_v28, %v153_v27 }
 0x12f   :  { %461 = vmatmul.mubr.bf16.vlgmr.msra.gmra.mrb[0].mxu1 %v155_v29 }
 0x202   :  { %v261_v33 = vpop.f32.mrb[0].mxu1 }
 0x203   :  { %v262_v34 = vadd.f32 %v397_v32, %v261_v33  ;;  %v462_v35 = vpop.f32.mrb[1].mxu1 }
 0x204   :  { %v264_v36 = vpop.f32.mrb[2].mxu1 }
 0x205   :  { %v265_v37 = vadd.f32 %v397_v32, %v264_v36  ;;  %v463_v38 = vpop.f32.mrb[3].mxu1  ;;  %v268_v39 = vmax.f32 %v262_v34, 0.0 }
 0x207   :  { %v269_v40 = vmax.f32 %v265_v37, 0.0 }
 0x209   :  { %v270_v41 = vpack.c.bf16 %v269_v40, %v268_v39 }
 0x20b   :  { %481 = vmatmul.mubr.bf16.vlgmr.msra.gmra.mrb[4].mxu0 %v270_v41 }
 0x2de   :  { %v376_v43 = vpop.f32.mrb[4].mxu0 }
 0x2df   :  { %v377_v44 = vadd.f32 %v406_v42, %v376_v43  ;;  %v482_v45 = vpop.f32.mrb[5].mxu0 }
 0x2e0   :  { %v379_v46 = vpop.f32.mrb[6].mxu0 }
 0x2e1   :  { %384 = vst.msk [vmem:[%s766_s7] sm:$0xff] %vm383_vm2, %v377_v44  ;;  %v380_v47 = vadd.f32 %v406_v42, %v379_v46  ;;  %v483_v48 = vpop.f32.mrb[7].mxu0 }
 0x2e3   :  { %385 = vst.msk [vmem:[%s766_s7 + $0x8] sm:$0xff] %vm383_vm2, %v380_v47 }
 0x2e4   :  { %390 = vsyncpa [#allocation3], 1 }
 0x2e5   :  { %391 = vsyncpa [#allocation5], 1 }
 0x2e6   :  { %392 = vsyncpa [#allocation8], 1 }

// kernel: tpu_custom_call.1
= control target key start
LH: loop header
LB: loop body
LE: loop exit
PB: predicated region body
PF: predicated region fallthrough
CT: control target
= control target key end

     0   :  { %12 = vsyncpa [#allocation3], 0  ;;  %s759_s0 = inlined_call_operand.hbm [shape: f32[16,32], index: 0, kind: input, shape index: {}]   ;;  %s760_s1 = inlined_call_operand.hbm [shape: bf16[32,128], index: 1, kind: input, shape index: {}]   ;;  %s761_s2 = inlined_call_operand.hbm [shape: bf16[128,128], index: 2, kind: input, shape index: {}]   ;;  %s762_s3 = inlined_call_operand.hbm [shape: bf16[128,128], index: 3, kind: input, shape index: {}]   ;;  %s763_s4 = inlined_call_operand.vmem [shape: f32[1,128], index: 4, kind: input, shape index: {}]   ;;  %s764_s5 = inlined_call_operand.vmem [shape: f32[1,128], index: 5, kind: input, shape index: {}]   ;;  %s765_s6 = inlined_call_operand.vmem [shape: f32[1,128], index: 6, kind: input, shape index: {}]   ;;  %s766_s7 = inlined_call_operand.vmem [shape: f32[16,4], index: 7, kind: output, shape index: {}]  }
   0x1   :  { %13 = vsyncpa [#allocation5], 0 }
   0x2   :  { %14 = vsyncpa [#allocation8], 0  ;;  %s606_s24 = smov [#allocation4]   ;;  %s512_s28 = scalar_lea.hbm %s760_s1, 256 }
   0x3   :  { %s32_s25 = sshll.u32 %s606_s24, 4  ;;  %p513_p0 = scmp.ne.s32.totalorder %s760_s1, %s512_s28  ;;  %s33_s25 = int_to_ptr.vmem [resolvable:$true] %s32_s25 }
   0x4   :  { %p516_p1 = scmp.lt.u32.totalorder %s512_s28, %s760_s1 }
   0x6   :  { %p518_p2 = pnand %p516_p1, %p513_p0 }
   0x8   :  { %521 = shalt.err (!%p518_p2)
}
   0x9   :  { %s522_s10 = scalar_lea.vmem %s33_s25, 256  ;;  %p527_p4 = scmp.lt.s32.totalorder %s33_s25, %s33_s25 }
   0xa   :  { %p523_p3 = scmp.ne.s32.totalorder %s33_s25, %s522_s10  ;;  %p528_p5 = scmp.lt.s32.totalorder %s522_s10, %s522_s10 }
   0xc   :  { %p529_p6 = por %p528_p5, %p527_p4 }
   0xe   :  { %p530_p7 = pnand %p529_p6, %p523_p3 }
  0x10   :  { %533 = shalt.err (!%p530_p7)
}
  0x11   :  { %s607_s11 = smov 64   ;;  %s608_s12 = smov 4  }
  0x12   :  { %38 = dma.hbm_to_vmem [thread:$0]  %s760_s1, 256, %s33_s25, [#allocation5], %s607_s11, %s607_s11, %s608_s12  }
  0x13   :  { %s609_s15 = smov [#allocation2]   ;;  %s534_s19 = scalar_lea.hbm %s759_s0, 256 }
  0x14   :  { %s20_s16 = sshll.u32 %s609_s15, 4  ;;  %p535_p8 = scmp.ne.s32.totalorder %s759_s0, %s534_s19  ;;  %s21_s16 = int_to_ptr.vmem [resolvable:$true] %s20_s16 }
  0x15   :  { %p538_p9 = scmp.lt.u32.totalorder %s534_s19, %s759_s0 }
  0x17   :  { %p540_p10 = pnand %p538_p9, %p535_p8 }
  0x19   :  { %543 = shalt.err (!%p540_p10)
}
  0x1a   :  { %s544_s24 = scalar_lea.vmem %s21_s16, 256  ;;  %p549_p12 = scmp.lt.s32.totalorder %s21_s16, %s21_s16 }
  0x1b   :  { %p545_p11 = scmp.ne.s32.totalorder %s21_s16, %s544_s24  ;;  %p550_p13 = scmp.lt.s32.totalorder %s544_s24, %s544_s24 }
  0x1d   :  { %p551_p0 = por %p550_p13, %p549_p12 }
  0x1f   :  { %p552_p1 = pnand %p551_p0, %p545_p11 }
  0x21   :  { %555 = shalt.err (!%p552_p1)
}
  0x22   :  { %s610_s1 = smov 128   ;;  %s611_s25 = smov 8  }
  0x23   :  { %26 = dma.hbm_to_vmem [thread:$0]  %s759_s0, 256, %s21_s16, [#allocation3], %s610_s1, %s610_s1, %s611_s25  }
  0x24   :  { %s612_s28 = smov [#allocation6]   ;;  %s613_s30 = smov [#allocation7]  }
  0x25   :  { %s44_s29 = sshll.u32 %s612_s28, 4  ;;  %s56_s8 = sshll.u32 %s613_s30, 4  ;;  %s45_s29 = int_to_ptr.vmem [resolvable:$true] %s44_s29  ;;  %s683_s8 = int_to_ptr.vmem [resolvable:$true] %s56_s8 }
  0x26   :  { %s556_s13 = scalar_lea.hbm %s761_s2, 1024 }
  0x27   :  { %p557_p2 = scmp.ne.s32.totalorder %s761_s2, %s556_s13  ;;  %p560_p3 = scmp.lt.u32.totalorder %s556_s13, %s761_s2 }
  0x29   :  { %p562_p4 = pnand %p560_p3, %p557_p2 }
  0x2b   :  { %565 = shalt.err (!%p562_p4)
}
  0x2c   :  { %s566_s0 = scalar_lea.vmem %s45_s29, 1024  ;;  %p571_p6 = scmp.lt.s32.totalorder %s45_s29, %s45_s29 }
  0x2d   :  { %p567_p5 = scmp.ne.s32.totalorder %s45_s29, %s566_s0  ;;  %p572_p7 = scmp.lt.s32.totalorder %s566_s0, %s566_s0 }
  0x2f   :  { %p573_p8 = por %p572_p7, %p571_p6 }
  0x31   :  { %p574_p9 = pnand %p573_p8, %p567_p5 }
  0x33   :  { %577 = shalt.err (!%p574_p9)
}
  0x34   :  { %50 = dma.hbm_to_vmem [thread:$0]  %s761_s2, 1024, %s45_s29, [#allocation5], %s607_s11, %s607_s11, %s608_s12  }
  0x35   :  { %s578_s22 = scalar_lea.hbm %s762_s3, 1024 }
  0x36   :  { %p579_p10 = scmp.ne.s32.totalorder %s762_s3, %s578_s22  ;;  %p582_p11 = scmp.lt.u32.totalorder %s578_s22, %s762_s3 }
  0x38   :  { %p584_p12 = pnand %p582_p11, %p579_p10 }
  0x3a   :  { %587 = shalt.err (!%p584_p12)
}
  0x3b   :  { %s588_s26 = scalar_lea.vmem %s683_s8, 1024  ;;  %p593_p0 = scmp.lt.s32.totalorder %s683_s8, %s683_s8 }
  0x3c   :  { %p589_p13 = scmp.ne.s32.totalorder %s683_s8, %s588_s26  ;;  %p594_p1 = scmp.lt.s32.totalorder %s588_s26, %s588_s26 }
  0x3e   :  { %p595_p2 = por %p594_p1, %p593_p0 }
  0x40   :  { %p596_p3 = pnand %p595_p2, %p589_p13 }
  0x42   :  { %599 = shalt.err (!%p596_p3)
}
  0x43   :  { %62 = dma.hbm_to_vmem [thread:$0]  %s762_s3, 1024, %s683_s8, [#allocation8], %s607_s11, %s607_s11, %s608_s12  }
  0x44   :  { %600 = dma.done.wait [#allocation3], 256  }
  0x45   :  { %601 = vsyncadd [#allocation3], 4294967040 }
  0x46   :  { %602 = dma.done.wait [#allocation5], 1280  }
  0x47   :  { %603 = vsyncadd [#allocation5], 4294966016 }
  0x48   :  { %604 = dma.done.wait [#allocation8], 1024  }
  0x49   :  { %605 = vsyncadd [#allocation8], 4294966272  ;;  %v614_v0 = vmov 0.0   ;;  %vm615_vm0 = vmmov 0   ;;  %v494_v1 = vld [vmem:[#allocation4] sm:$0xff]   ;;  %v495_v2 = vld [vmem:[#allocation4 + $0x8] sm:$0xff]  }
  0x4a   :  { %436 = vmatprep.subr.bf16.mxu0 %v614_v0  ;;  %440 = vmatprep.mubr.msk.bf16.mxu0 %vm615_vm0, %v614_v0  ;;  %v82_v3 = vld [vmem:[#allocation2] sm:$0xff]  ;;  %v83_v4 = vld [vmem:[#allocation2 + $0x8] sm:$0xff]  ;;  %vm108_vm1 = vcmask 261120   ;;  %v498_v8 = vld [vmem:[#allocation6 + $0x10] sm:$0xff]   ;;  %vm383_vm2 = vcmask 31744  }
  0x4b   :  { %444 = vmatprep.subr.bf16.mxu1 %v614_v0  ;;  %460 = vmatprep.mubr.msk.bf16.mxu1 %vm615_vm0, %v614_v0  ;;  %v496_v5 = vld [vmem:[#allocation6] sm:$0xff]   ;;  %v84_v6 = vpack.c.bf16 %v83_v4, %v82_v3  ;;  %v497_v7 = vld [vmem:[#allocation6 + $0x8] sm:$0xff]   ;;  %v499_v9 = vld [vmem:[#allocation6 + $0x18] sm:$0xff]  }
  0x4c   :  { %437 = vmatpush3.bf16.msra.mxu0 %v494_v1  ;;  %445 = vmatpush3.bf16.msra.mxu1 %v496_v5  ;;  %v500_v10 = vld [vmem:[#allocation6 + $0x20] sm:$0xff]   ;;  %v501_v11 = vld [vmem:[#allocation6 + $0x28] sm:$0xff]   ;;  %v502_v12 = vld [vmem:[#allocation6 + $0x30] sm:$0xff]  }
  0x4d   :  { %438 = vmatprep.subr.bf16.mxu0 %v614_v0  ;;  %446 = vmatprep.subr.bf16.mxu1 %v614_v0  ;;  %v503_v13 = vld [vmem:[#allocation6 + $0x38] sm:$0xff]   ;;  %v504_v14 = vld [vmem:[#allocation7] sm:$0xff]   ;;  %v505_v15 = vld [vmem:[#allocation7 + $0x8] sm:$0xff]  }
  0x4e   :  { %v506_v16 = vld [vmem:[#allocation7 + $0x10] sm:$0xff]   ;;  %v507_v17 = vld [vmem:[#allocation7 + $0x18] sm:$0xff]   ;;  %v508_v18 = vld [vmem:[#allocation7 + $0x20] sm:$0xff]  }
  0x4f   :  { %v509_v19 = vld [vmem:[#allocation7 + $0x28] sm:$0xff]   ;;  %v393_v20 = vld [vmem:[%s763_s4] ss:$0 sm:$0xff]  ;;  %v510_v30 = vld [vmem:[#allocation7 + $0x30] sm:$0xff]  }
  0x50   :  { %439 = vmatpush3.bf16.msra.mxu0 %v495_v2  ;;  %447 = vmatpush3.bf16.msra.mxu1 %v497_v7  ;;  %v511_v31 = vld [vmem:[#allocation7 + $0x38] sm:$0xff]   ;;  %v397_v32 = vld [vmem:[%s764_s5] ss:$0 sm:$0xff] }
  0x51   :  { %464 = vmatprep.subr.bf16.mxu0 %v614_v0  ;;  %448 = vmatprep.subr.bf16.mxu1 %v614_v0  ;;  %v406_v42 = vld [vmem:[%s765_s6] ss:$0 sm:$0xff] }
  0x53   :  { %441 = vmatmul.mubr.msk.bf16.vlgmr.msra.gmra.mrb[0].mxu0 %vm108_vm1, %v84_v6 }
  0x54   :  { %480 = vmatprep.mubr.msk.bf16.mxu0 %vm615_vm0, %v614_v0  ;;  %449 = vmatpush3.bf16.msra.mxu1 %v498_v8 }
  0x55   :  { %450 = vmatprep.subr.bf16.mxu1 %v614_v0  ;;  %465 = vmatpush3.bf16.msra.mxu0 %v504_v14 }
  0x56   :  { %466 = vmatprep.subr.bf16.mxu0 %v614_v0 }
  0x58   :  { %451 = vmatpush3.bf16.msra.mxu1 %v499_v9 }
  0x59   :  { %452 = vmatprep.subr.bf16.mxu1 %v614_v0  ;;  %467 = vmatpush3.bf16.msra.mxu0 %v505_v15 }
  0x5a   :  { %468 = vmatprep.subr.bf16.mxu0 %v614_v0 }
  0x5c   :  { %453 = vmatpush3.bf16.msra.mxu1 %v500_v10 }
  0x5d   :  { %454 = vmatprep.subr.bf16.mxu1 %v614_v0  ;;  %469 = vmatpush3.bf16.msra.mxu0 %v506_v16 }
  0x5e   :  { %470 = vmatprep.subr.bf16.mxu0 %v614_v0 }
  0x60   :  { %455 = vmatpush3.bf16.msra.mxu1 %v501_v11 }
  0x61   :  { %456 = vmatprep.subr.bf16.mxu1 %v614_v0  ;;  %471 = vmatpush3.bf16.msra.mxu0 %v507_v17 }
  0x62   :  { %472 = vmatprep.subr.bf16.mxu0 %v614_v0 }
  0x64   :  { %457 = vmatpush3.bf16.msra.mxu1 %v502_v12 }
  0x65   :  { %458 = vmatprep.subr.bf16.mxu1 %v614_v0  ;;  %473 = vmatpush3.bf16.msra.mxu0 %v508_v18 }
  0x66   :  { %474 = vmatprep.subr.bf16.mxu0 %v614_v0 }
  0x68   :  { %459 = vmatpush3.bf16.msra.mxu1 %v503_v13 }
  0x69   :  { %475 = vmatpush3.bf16.msra.mxu0 %v509_v19 }
  0x6a   :  { %476 = vmatprep.subr.bf16.mxu0 %v614_v0 }
  0x6d   :  { %477 = vmatpush3.bf16.msra.mxu0 %v510_v30 }
  0x6e   :  { %478 = vmatprep.subr.bf16.mxu0 %v614_v0 }
  0x71   :  { %479 = vmatpush3.bf16.msra.mxu0 %v511_v31 }
 0x126   :  { %v146_v21 = vpop.f32.mrb[0].mxu0 }
 0x127   :  { %v147_v22 = vadd.f32 %v393_v20, %v146_v21  ;;  %v442_v23 = vpop.f32.mrb[1].mxu0 }
 0x128   :  { %v149_v24 = vpop.f32.mrb[2].mxu0 }
 0x129   :  { %v150_v25 = vadd.f32 %v393_v20, %v149_v24  ;;  %v443_v26 = vpop.f32.mrb[3].mxu0  ;;  %v153_v27 = vmax.f32 %v147_v22, 0.0 }
 0x12b   :  { %v154_v28 = vmax.f32 %v150_v25, 0.0 }
 0x12d   :  { %v155_v29 = vpack.c.bf16 %v154_v28, %v153_v27 }
 0x12f   :  { %461 = vmatmul.mubr.bf16.vlgmr.msra.gmra.mrb[0].mxu1 %v155_v29 }
 0x202   :  { %v261_v33 = vpop.f32.mrb[0].mxu1 }
 0x203   :  { %v262_v34 = vadd.f32 %v397_v32, %v261_v33  ;;  %v462_v35 = vpop.f32.mrb[1].mxu1 }
 0x204   :  { %v264_v36 = vpop.f32.mrb[2].mxu1 }
 0x205   :  { %v265_v37 = vadd.f32 %v397_v32, %v264_v36  ;;  %v463_v38 = vpop.f32.mrb[3].mxu1  ;;  %v268_v39 = vmax.f32 %v262_v34, 0.0 }
 0x207   :  { %v269_v40 = vmax.f32 %v265_v37, 0.0 }
 0x209   :  { %v270_v41 = vpack.c.bf16 %v269_v40, %v268_v39 }
 0x20b   :  { %481 = vmatmul.mubr.bf16.vlgmr.msra.gmra.mrb[4].mxu0 %v270_v41 }
 0x2de   :  { %v376_v43 = vpop.f32.mrb[4].mxu0 }
 0x2df   :  { %v377_v44 = vadd.f32 %v406_v42, %v376_v43  ;;  %v482_v45 = vpop.f32.mrb[5].mxu0 }
 0x2e0   :  { %v379_v46 = vpop.f32.mrb[6].mxu0 }
 0x2e1   :  { %384 = vst.msk [vmem:[%s766_s7] sm:$0xff] %vm383_vm2, %v377_v44  ;;  %v380_v47 = vadd.f32 %v406_v42, %v379_v46  ;;  %v483_v48 = vpop.f32.mrb[7].mxu0 }
 0x2e3   :  { %385 = vst.msk [vmem:[%s766_s7 + $0x8] sm:$0xff] %vm383_vm2, %v380_v47 }
 0x2e4   :  { %390 = vsyncpa [#allocation3], 1 }
 0x2e5   :  { %391 = vsyncpa [#allocation5], 1 }
 0x2e6   :  { %392 = vsyncpa [#allocation8], 1 }

</bundles_post_ra>
